<compile_context>
chip_gen: v6e
topology: v6e:2x2x1
jax: 0.10.0
libtpu: 0.0.40
codegen_flags: <defaults>
</compile_context>

<pallas_src>
import jax
import jax.numpy as jnp
from jax.experimental import pallas as pl
from jax.experimental.pallas import tpu as pltpu


def _mlp_kernel(x_ref, w1_ref, b1_ref, w2_ref, b2_ref, o_ref):
    # Cast f32 activations to bf16 in VMEM; dominant matmul on the bf16 MXU
    # with f32 accumulation.
    x = x_ref[...].astype(jnp.bfloat16)
    h = jnp.dot(x, w1_ref[...], preferred_element_type=jnp.float32)
    h = h + b1_ref[...]

    # Exact (erf-based) GELU, matching torch.nn.GELU() default.
    h = 0.5 * h * (1.0 + jax.lax.erf(h * jnp.float32(0.7071067811865476)))

    # Second (tiny) matmul also in bf16; bias added in f32.
    logits = jnp.dot(h.astype(jnp.bfloat16), w2_ref[...],
                     preferred_element_type=jnp.float32) + b2_ref[...]

    # Numerically stable softmax over classes; exact divide (free under DMA).
    m = jnp.max(logits, axis=-1, keepdims=True)
    e = jnp.exp(logits - m)
    o_ref[...] = (e / jnp.sum(e, axis=-1, keepdims=True)).astype(o_ref.dtype)


def _round_up(x, m):
    return (x + m - 1) // m * m


def simple_mlp_forward(x_nchw, w1, b1, w2, b2, *, block_rows=1024):
    """x_nchw: (B, ...) float32; w1:(in,100) b1:(100,) w2:(100,C) b2:(C,).
    Returns softmax probabilities (B, num_classes), float32."""
    B = x_nchw.shape[0]
    x2d = x_nchw.reshape(B, -1).astype(jnp.float32)   # nn.Flatten(); kernel reads f32
    in_features = x2d.shape[1]
    hidden = w1.shape[1]
    num_classes = w2.shape[1]

    # Lane-align hidden (100 -> 128). Exact: padded lanes contribute nothing.
    # Keep hidden_p = 128 (do NOT pad to 256): kernel is DMA-bound, MXU
    # occupancy is irrelevant, and 128 matches v5e's MXU width.
    hidden_p = _round_up(hidden, 128)
    pad_h = hidden_p - hidden
    w1p = jnp.pad(w1, ((0, 0), (0, pad_h))).astype(jnp.bfloat16)
    b1p = jnp.pad(b1, ((0, pad_h),)).reshape(1, hidden_p).astype(jnp.float32)
    w2p = jnp.pad(w2, ((0, pad_h), (0, 0))).astype(jnp.bfloat16)
    b2p = b2.reshape(1, num_classes).astype(jnp.float32)

    # --- Batch tile selection -------------------------------------------------
    # Cap so the double-buffered f32 x tile stays <= ~16 MiB.
    tm_vmem_cap = max(8, ((16 << 20) // (2 * in_features * 4)) // 8 * 8)
    tm = min(block_rows, tm_vmem_cap)
    if B > 8:
        # Aim for >= 2 grid blocks so v7x's 2 TensorCores both get work.
        tm = min(tm, _round_up(pl.cdiv(B, 2), 8))
    tm = max(8, (min(tm, _round_up(B, 8)) // 8) * 8)
    n_blocks = pl.cdiv(B, tm)   # ragged last block: OOB rows computed on
                                # garbage, never written back (out_shape is B rows).

    # Generous VMEM estimate (x + out double-buffered, resident weights,
    # in-kernel bf16 copy and f32 h intermediate) with headroom, clamped to a
    # range that is safe on v5e (128 MiB), v6e (128 MiB) and v7x (64 MiB).
    est_vmem = (2 * tm * in_features * 4          # x tile, double-buffered f32
                + 2 * tm * 128 * 4                # out tile (lane-padded), 2 bufs
                + 4 * in_features * hidden_p      # w1 bf16, 2 bufs
                + tm * in_features * 2            # in-kernel bf16 cast of x
                + tm * hidden_p * 4               # f32 h intermediate
                + (2 << 20))                      # misc headroom
    vmem_limit = int(min(max(est_vmem, 16 << 20), 40 << 20))

    cost = pl.CostEstimate(
        flops=2 * B * in_features * hidden_p + 2 * B * hidden_p * num_classes,
        transcendentals=B * (hidden_p + num_classes),
        bytes_accessed=(B * in_features * 4 + B * num_classes * 4
                        + in_features * hidden_p * 2
                        + hidden_p * num_classes * 2),
    )

    # NOTE: weight/bias specs could use pipeline_mode=pl.Buffered(1) to save a
    # few hundred KiB of VMEM; skipped since the x tile dominates the budget.
    out = pl.pallas_call(
        _mlp_kernel,
        out_shape=jax.ShapeDtypeStruct((B, num_classes), jnp.float32),
        grid=(n_blocks,),
        in_specs=[
            pl.BlockSpec((tm, in_features), lambda i: (i, 0)),          # x tile
            pl.BlockSpec((in_features, hidden_p), lambda i: (0, 0)),    # w1 resident
            pl.BlockSpec((1, hidden_p), lambda i: (0, 0)),              # b1 resident
            pl.BlockSpec((hidden_p, num_classes), lambda i: (0, 0)),    # w2 resident
            pl.BlockSpec((1, num_classes), lambda i: (0, 0)),           # b2 resident
        ],
        out_specs=pl.BlockSpec((tm, num_classes), lambda i: (i, 0)),
        compiler_params=pltpu.CompilerParams(
            dimension_semantics=("parallel",),
            vmem_limit_bytes=vmem_limit,
        ),
        cost_estimate=cost,
    )(x2d, w1p, b1p, w2p, b2p)
    return out


def init_params(key, in_features, hidden, num_classes):
    """Deterministic init mimicking nn.Linear's uniform(-1/sqrt(fan_in), 1/sqrt(fan_in))."""
    k1, k2, k3, k4 = jax.random.split(key, 4)
    bound1 = 1.0 / jnp.sqrt(jnp.float32(in_features))
    bound2 = 1.0 / jnp.sqrt(jnp.float32(hidden))
    w1 = jax.random.uniform(k1, (in_features, hidden), jnp.float32, -bound1, bound1)
    b1 = jax.random.uniform(k2, (hidden,), jnp.float32, -bound1, bound1)
    w2 = jax.random.uniform(k3, (hidden, num_classes), jnp.float32, -bound2, bound2)
    b2 = jax.random.uniform(k4, (num_classes,), jnp.float32, -bound2, bound2)
    return w1, b1, w2, b2


if __name__ == "__main__":
    key = jax.random.PRNGKey(0)
    kx, kp = jax.random.split(key)

    B, C, H, W = 2, 4, 16, 16
    in_features = C * H * W          # 1024
    hidden = 100
    num_classes = 10

    x = jax.random.normal(kx, (B, C, H, W), jnp.float32)
    w1, b1, w2, b2 = init_params(kp, in_features, hidden, num_classes)

    probs = simple_mlp_forward(x, w1, b1, w2, b2)
    probs = jax.block_until_ready(probs)

    # Sanity check against a pure-JAX f32 reference. Tolerance relaxed because
    # both matmuls run in bf16 on the MXU (f32 accumulation).
    x2d = x.reshape(B, -1)
    h_ref = x2d @ w1 + b1
    h_ref = 0.5 * h_ref * (1.0 + jax.lax.erf(h_ref / jnp.sqrt(2.0)))
    logits_ref = h_ref @ w2 + b2
    ref = jax.nn.softmax(logits_ref, axis=1)
    assert probs.shape == (B, num_classes)
    assert jnp.allclose(probs, ref, atol=2e-2, rtol=2e-2)
    assert jnp.allclose(jnp.sum(probs, axis=1), 1.0, atol=1e-5)

    print("KERNEL_OK")
</pallas_src>

<mosaic_0001>
module attributes {stable_mosaic.version = 11 : i64} {
  func.func @_mlp_kernel(%arg0: i32, %arg1: memref<8x1024xf32, #tpu.memory_space<vmem>>, %arg2: memref<1024x128xbf16, #tpu.memory_space<vmem>>, %arg3: memref<1x128xf32, #tpu.memory_space<vmem>>, %arg4: memref<128x10xbf16, #tpu.memory_space<vmem>>, %arg5: memref<1x10xf32, #tpu.memory_space<vmem>>, %arg6: memref<8x10xf32, #tpu.memory_space<vmem>>) attributes {dimension_semantics = [#tpu.dimension_semantics<parallel>], iteration_bounds = array<i64: 1>, scalar_prefetch = 0 : i64, scratch_operands = 0 : i64, tpu.core_type = #tpu.core_type<tc>, window_params = [{transform_indices = @transform_0, window_bounds = array<i64: 8, 1024>}, {pipeline_mode = #tpu.pipeline_mode<synchronous>, transform_indices = @transform_1, window_bounds = array<i64: 1024, 128>}, {pipeline_mode = #tpu.pipeline_mode<synchronous>, transform_indices = @transform_2, window_bounds = array<i64: 1, 128>}, {pipeline_mode = #tpu.pipeline_mode<synchronous>, transform_indices = @transform_3, window_bounds = array<i64: 128, 10>}, {pipeline_mode = #tpu.pipeline_mode<synchronous>, transform_indices = @transform_4, window_bounds = array<i64: 1, 10>}, {transform_indices = @transform_5, window_bounds = array<i64: 8, 10>}]} {
    %c0 = arith.constant 0 : index
    %c0_0 = arith.constant 0 : index
    %0 = vector.load %arg1[%c0, %c0_0] : memref<8x1024xf32, #tpu.memory_space<vmem>>, vector<8x1024xf32>
    %1 = arith.truncf %0 : vector<8x1024xf32> to vector<8x1024xbf16>
    %c0_1 = arith.constant 0 : index
    %c0_2 = arith.constant 0 : index
    %2 = vector.load %arg2[%c0_1, %c0_2] : memref<1024x128xbf16, #tpu.memory_space<vmem>>, vector<1024x128xbf16>
    %cst = arith.constant dense<0.000000e+00> : vector<8x128xf32>
    %3 = tpu.matmul %1, %2, %cst {dimension_numbers = #tpu.dot_dimension_numbers<[1], [0], [0], [1], [0, 0, 1, 1], [], []>} : vector<8x1024xbf16>, vector<1024x128xbf16>, vector<8x128xf32> -> vector<8x128xf32>
    %c0_3 = arith.constant 0 : index
    %c0_4 = arith.constant 0 : index
    %4 = vector.load %arg3[%c0_3, %c0_4] : memref<1x128xf32, #tpu.memory_space<vmem>>, vector<1x128xf32>
    %5 = vector.broadcast %4 : vector<1x128xf32> to vector<8x128xf32>
    %6 = arith.addf %3, %5 : vector<8x128xf32>
    %cst_5 = arith.constant 5.000000e-01 : f32
    %7 = vector.broadcast %cst_5 : f32 to vector<8x128xf32>
    %8 = arith.mulf %7, %6 : vector<8x128xf32>
    %cst_6 = arith.constant 0.707106769 : f32
    %9 = vector.broadcast %cst_6 : f32 to vector<8x128xf32>
    %10 = arith.mulf %6, %9 : vector<8x128xf32>
    %11 = math.erf %10 : vector<8x128xf32>
    %cst_7 = arith.constant 1.000000e+00 : f32
    %12 = vector.broadcast %cst_7 : f32 to vector<8x128xf32>
    %13 = arith.addf %12, %11 : vector<8x128xf32>
    %14 = arith.mulf %8, %13 : vector<8x128xf32>
    %15 = arith.truncf %14 : vector<8x128xf32> to vector<8x128xbf16>
    %c0_8 = arith.constant 0 : index
    %c0_9 = arith.constant 0 : index
    %16 = vector.load %arg4[%c0_8, %c0_9] : memref<128x10xbf16, #tpu.memory_space<vmem>>, vector<128x10xbf16>
    %cst_10 = arith.constant dense<0.000000e+00> : vector<8x10xf32>
    %17 = tpu.matmul %15, %16, %cst_10 {dimension_numbers = #tpu.dot_dimension_numbers<[1], [0], [0], [1], [0, 0, 1, 1], [], []>} : vector<8x128xbf16>, vector<128x10xbf16>, vector<8x10xf32> -> vector<8x10xf32>
    %c0_11 = arith.constant 0 : index
    %c0_12 = arith.constant 0 : index
    %18 = vector.load %arg5[%c0_11, %c0_12] : memref<1x10xf32, #tpu.memory_space<vmem>>, vector<1x10xf32>
    %19 = vector.broadcast %18 : vector<1x10xf32> to vector<8x10xf32>
    %20 = arith.addf %17, %19 : vector<8x10xf32>
    %cst_13 = arith.constant dense<0xFF800000> : vector<8xf32>
    %21 = vector.multi_reduction <maximumf>, %20, %cst_13 [1] : vector<8x10xf32> to vector<8xf32>
    %22 = vector.shape_cast %21 : vector<8xf32> to vector<8x1xf32>
    %23 = vector.broadcast %22 : vector<8x1xf32> to vector<8x10xf32>
    %24 = arith.subf %20, %23 : vector<8x10xf32>
    %25 = math.exp %24 : vector<8x10xf32>
    %cst_14 = arith.constant dense<0.000000e+00> : vector<8xf32>
    %26 = vector.multi_reduction <add>, %25, %cst_14 [1] : vector<8x10xf32> to vector<8xf32>
    %27 = vector.shape_cast %26 : vector<8xf32> to vector<8x1xf32>
    %28 = vector.broadcast %27 : vector<8x1xf32> to vector<8x10xf32>
    %29 = arith.divf %25, %28 : vector<8x10xf32>
    %c0_15 = arith.constant 0 : index
    %c0_16 = arith.constant 0 : index
    %30 = vector.load %arg6[%c0_15, %c0_16] : memref<8x10xf32, #tpu.memory_space<vmem>>, vector<8x10xf32>
    tpu.vector_store %arg6[%c0_15, %c0_16], %29 {strides = array<i32>} : memref<8x10xf32, #tpu.memory_space<vmem>>, vector<8x10xf32>,
    return
  }
  func.func @transform_0(%arg0: i32) -> (i32, i32) {
    %c0_i32 = arith.constant 0 : i32
    %c0_i32_0 = arith.constant 0 : i32
    return %arg0, %c0_i32 : i32, i32
  }
  func.func @transform_1(%arg0: i32) -> (i32, i32) {
    %c0_i32 = arith.constant 0 : i32
    %c0_i32_0 = arith.constant 0 : i32
    %c0_i32_1 = arith.constant 0 : i32
    return %c0_i32, %c0_i32_0 : i32, i32
  }
  func.func @transform_2(%arg0: i32) -> (i32, i32) {
    %c0_i32 = arith.constant 0 : i32
    %c0_i32_0 = arith.constant 0 : i32
    %c0_i32_1 = arith.constant 0 : i32
    return %c0_i32, %c0_i32_0 : i32, i32
  }
  func.func @transform_3(%arg0: i32) -> (i32, i32) {
    %c0_i32 = arith.constant 0 : i32
    %c0_i32_0 = arith.constant 0 : i32
    %c0_i32_1 = arith.constant 0 : i32
    return %c0_i32, %c0_i32_0 : i32, i32
  }
  func.func @transform_4(%arg0: i32) -> (i32, i32) {
    %c0_i32 = arith.constant 0 : i32
    %c0_i32_0 = arith.constant 0 : i32
    %c0_i32_1 = arith.constant 0 : i32
    return %c0_i32, %c0_i32_0 : i32, i32
  }
  func.func @transform_5(%arg0: i32) -> (i32, i32) {
    %c0_i32 = arith.constant 0 : i32
    %c0_i32_0 = arith.constant 0 : i32
    return %arg0, %c0_i32 : i32, i32
  }
}

</mosaic_0001>

<bundles_post_ra>
// kernel: tpu_custom_call.1
= control target key start
LH: loop header
LB: loop body
LE: loop exit
PB: predicated region body
PF: predicated region fallthrough
CT: control target
= control target key end

     0   :  { %10 = vsyncpa [#allocation3], 0  ;;  %s1412_s0 = inlined_call_operand.vmem [shape: f32[2,1024], index: 0, kind: input, shape index: {}]   ;;  %s1413_s1 = inlined_call_operand.hbm [shape: bf16[1024,128], index: 1, kind: input, shape index: {}]   ;;  %s1414_s2 = inlined_call_operand.vmem [shape: f32[1,128], index: 2, kind: input, shape index: {}]   ;;  %s1415_s3 = inlined_call_operand.vmem [shape: bf16[128,10], index: 3, kind: input, shape index: {}]   ;;  %s1416_s4 = inlined_call_operand.vmem [shape: f32[1,10], index: 4, kind: input, shape index: {}]   ;;  %s1417_s5 = inlined_call_operand.hbm [shape: f32[2,10], index: 5, kind: output, shape index: {}]  }
   0x1   :  { %11 = vsyncpa [#allocation4], 0  ;;  %s1300_s18 = smov [#allocation2]  }
   0x2   :  { %s19_s19 = sshll.u32 %s1300_s18, 4  ;;  %s20_s19 = int_to_ptr.vmem [resolvable:$true] %s19_s19 }
   0x3   :  { %s1264_s20 = scalar_lea.vmem %s20_s19, 8192  ;;  %p1269_p1 = scmp.lt.s32.totalorder %s20_s19, %s20_s19 }
   0x4   :  { %p1265_p0 = scmp.ne.s32.totalorder %s20_s19, %s1264_s20  ;;  %p1270_p2 = scmp.lt.s32.totalorder %s1264_s20, %s1264_s20 }
   0x6   :  { %p1271_p3 = por %p1270_p2, %p1269_p1 }
   0x8   :  { %p1272_p4 = pnand %p1271_p3, %p1265_p0 }
   0xa   :  { %1275 = shalt.err (!%p1272_p4)
}
   0xb   :  { %s1301_s21 = smov 64   ;;  %s1302_s22 = smov 4  }
   0xc   :  { %25 = dma.hbm_to_vmem [thread:$0]  %s1413_s1, 8192, %s20_s19, [#allocation3], %s1301_s21, %s1301_s21, %s1302_s22  }
   0xd   :  { %1296 = dma.done.wait [#allocation3], 8192  }
   0xe   :  { %1297 = vsyncadd [#allocation3], 4294959104  ;;  %v1166_v0 = vld [vmem:[#allocation2 + $0x78] sm:$0xff]   ;;  %v1170_v4 = vld [vmem:[#allocation2 + $0x70] sm:$0xff]   ;;  %v1303_v24 = vmov 1983009808   ;;  %v59_v26 = vlaneseq }
   0xf   :  { %v1167_v1 = vld [vmem:[#allocation2 + $0xf8] sm:$0xff]   ;;  %1040 = vmatprep.subr.bf16.mxu0 %v1166_v0  ;;  %v1171_v5 = vld [vmem:[#allocation2 + $0xf0] sm:$0xff]   ;;  %v1174_v8 = vld [vmem:[#allocation2 + $0x68] sm:$0xff]   ;;  %v57_v25 = vunpack.c.l.s4 %v1303_v24  ;;  %vm1305_vm0 = vmmov 0   ;;  %vm936_vm1 = vcmask 80896  }
  0x10   :  { %v1168_v2 = vld [vmem:[#allocation2 + $0x38] sm:$0xff]   ;;  %1062 = vmatprep.subr.bf16.mxu1 %v1167_v1  ;;  %v1172_v6 = vld [vmem:[#allocation2 + $0x30] sm:$0xff]   ;;  %v1175_v9 = vld [vmem:[#allocation2 + $0xe8] sm:$0xff]   ;;  %v60_v32 = vshrl.u32 %v59_v26, 7 }
  0x11   :  { %v1169_v3 = vld [vmem:[#allocation2 + $0xb8] sm:$0xff]   ;;  %1041 = vmatpush3.bf16.msra.mxu0 %v1168_v2  ;;  %v1173_v7 = vld [vmem:[#allocation2 + $0xb0] sm:$0xff]   ;;  %v1176_v10 = vld [vmem:[#allocation2 + $0x28] sm:$0xff]   ;;  %v58_v31 = vunpack.c.0.s8 %v57_v25 }
  0x12   :  { %1063 = vmatpush3.bf16.msra.mxu1 %v1169_v3  ;;  %1042 = vmatprep.subr.bf16.mxu0 %v1170_v4  ;;  %v1177_v11 = vld [vmem:[#allocation2 + $0xa8] sm:$0xff]   ;;  %v1178_v12 = vld [vmem:[#allocation2 + $0x60] sm:$0xff]   ;;  %v1182_v16 = vld [vmem:[#allocation2 + $0x58] sm:$0xff]  }
  0x13   :  { %1064 = vmatprep.subr.bf16.mxu1 %v1171_v5  ;;  %v1179_v13 = vld [vmem:[#allocation2 + $0xe0] sm:$0xff]   ;;  %v1183_v17 = vld [vmem:[#allocation2 + $0xd8] sm:$0xff]   ;;  %v1186_v20 = vld [vmem:[#allocation2 + $0x50] sm:$0xff]   ;;  %v1342_v37 = vsub.s32 %v58_v31, %v60_v32 }
  0x14   :  { %v1180_v14 = vld [vmem:[#allocation2 + $0x20] sm:$0xff]   ;;  %v1184_v18 = vld [vmem:[#allocation2 + $0x18] sm:$0xff]   ;;  %v1187_v21 = vld [vmem:[#allocation2 + $0xd0] sm:$0xff]  }
  0x15   :  { %1043 = vmatpush3.bf16.msra.mxu0 %v1172_v6  ;;  %v1181_v15 = vld [vmem:[#allocation2 + $0xa0] sm:$0xff]   ;;  %v1185_v19 = vld [vmem:[#allocation2 + $0x98] sm:$0xff]   ;;  %v1188_v22 = vld [vmem:[#allocation2 + $0x10] sm:$0xff]  }
  0x16   :  { %1065 = vmatpush3.bf16.msra.mxu1 %v1173_v7  ;;  %1044 = vmatprep.subr.bf16.mxu0 %v1174_v8  ;;  %v1189_v23 = vld [vmem:[#allocation2 + $0x90] sm:$0xff]   ;;  %v1190_v27 = vld [vmem:[#allocation2 + $0x48] sm:$0xff]   ;;  %v1194_v33 = vld [vmem:[#allocation2 + $0x40] sm:$0xff]  }
  0x17   :  { %1066 = vmatprep.subr.bf16.mxu1 %v1175_v9  ;;  %v1191_v28 = vld [vmem:[#allocation2 + $0xc8] sm:$0xff]   ;;  %v1195_v34 = vld [vmem:[#allocation2 + $0xc0] sm:$0xff]   ;;  %v1204_v44 = vld [vmem:[#allocation2 + $0x178] sm:$0xff]  }
  0x18   :  { %v1192_v29 = vld [vmem:[#allocation2 + $0x8] sm:$0xff]   ;;  %v1196_v35 = vld [vmem:[#allocation2] sm:$0xff]   ;;  %v1205_v47 = vld [vmem:[#allocation2 + $0x1f8] sm:$0xff]  }
  0x19   :  { %1045 = vmatpush3.bf16.msra.mxu0 %v1176_v10  ;;  %v1193_v30 = vld [vmem:[#allocation2 + $0x88] sm:$0xff]   ;;  %v1197_v36 = vld [vmem:[#allocation2 + $0x80] sm:$0xff]   ;;  %v1206_v50 = vld [vmem:[#allocation2 + $0x138] sm:$0xff]  }
  0x1a   :  { %1067 = vmatpush3.bf16.msra.mxu1 %v1177_v11  ;;  %1046 = vmatprep.subr.bf16.mxu0 %v1178_v12  ;;  %v1198_v38 = vld [vmem:[%s1412_s0] ss:$16 sps:$4 sm:$0xff]   ;;  %v1202_v40 = vld [vmem:[%s1412_s0 + $0x4] ss:$16 sps:$4 sm:$0xff]   ;;  %v1207_v53 = vld [vmem:[#allocation2 + $0x1b8] sm:$0xff]  }
  0x1b   :  { %1068 = vmatprep.subr.bf16.mxu1 %v1179_v13  ;;  %v1200_v39 = vld [vmem:[%s1412_s0 + $0x20] ss:$16 sps:$4 sm:$0xff]   ;;  %v1203_v41 = vld [vmem:[%s1412_s0 + $0x24] ss:$16 sps:$4 sm:$0xff]   ;;  %v62_v42 = vrot.slane %v1198_v38, %v1342_v37  ;;  %v69_v45 = vrot.slane %v1202_v40, %v1342_v37  ;;  %v1212_v62 = vld [vmem:[#allocation2 + $0x168] sm:$0xff]  }
  0x1c   :  { %v76_v43 = vrot.slane %v1200_v39, %v1342_v37  ;;  %v83_v46 = vrot.slane %v1203_v41, %v1342_v37  ;;  %v1208_v56 = vld [vmem:[#allocation2 + $0x170] sm:$0xff]   ;;  %v1213_v63 = vld [vmem:[#allocation2 + $0x1e8] sm:$0xff]   ;;  %v1216_v2 = vld [vmem:[#allocation2 + $0x160] sm:$0xff]   ;;  %v1304_v39 = vmov 0.0  }
  0x1d   :  { %1047 = vmatpush3.bf16.msra.mxu0 %v1180_v14  ;;  %v1209_v59 = vld [vmem:[#allocation2 + $0x1f0] sm:$0xff]   ;;  %v1214_v0 = vld [vmem:[#allocation2 + $0x128] sm:$0xff]   ;;  %v1217_v3 = vld [vmem:[#allocation2 + $0x1e0] sm:$0xff]  }
  0x1e   :  { %1069 = vmatpush3.bf16.msra.mxu1 %v1181_v15  ;;  %1048 = vmatprep.subr.bf16.mxu0 %v1182_v16  ;;  %v85_v48 = vcombine.high %v62_v42, %v76_v43  ;;  %v84_v49 = vcombine.low %v62_v42, %v76_v43  ;;  %v87_v51 = vcombine.high %v69_v45, %v83_v46  ;;  %v1210_v60 = vld [vmem:[#allocation2 + $0x130] sm:$0xff]   ;;  %v1215_v1 = vld [vmem:[#allocation2 + $0x1a8] sm:$0xff]   ;;  %v1218_v4 = vld [vmem:[#allocation2 + $0x120] sm:$0xff]  }
  0x1f   :  { %1070 = vmatprep.subr.bf16.mxu1 %v1183_v17  ;;  %v86_v52 = vcombine.low %v69_v45, %v83_v46  ;;  %v1211_v61 = vld [vmem:[#allocation2 + $0x1b0] sm:$0xff]   ;;  %v1219_v5 = vld [vmem:[#allocation2 + $0x1a0] sm:$0xff]   ;;  %v1220_v6 = vld [vmem:[#allocation2 + $0x158] sm:$0xff]  }
  0x20   :  { %v133_v54 = vpack.c.bf16 %v85_v48, %v85_v48  ;;  %v132_v55 = vpack.c.bf16 %v84_v49, %v84_v49  ;;  %v135_v57 = vpack.c.bf16 %v87_v51, %v87_v51  ;;  %v1221_v7 = vld [vmem:[#allocation2 + $0x1d8] sm:$0xff]   ;;  %v1224_v10 = vld [vmem:[#allocation2 + $0x150] sm:$0xff]   ;;  %v1228_v14 = vld [vmem:[#allocation2 + $0x148] sm:$0xff]  }
  0x21   :  { %1049 = vmatpush3.bf16.msra.mxu0 %v1184_v18  ;;  %v134_v58 = vpack.c.bf16 %v86_v52, %v86_v52  ;;  %v1222_v8 = vld [vmem:[#allocation2 + $0x118] sm:$0xff]   ;;  %v1225_v11 = vld [vmem:[#allocation2 + $0x1d0] sm:$0xff]   ;;  %v1229_v15 = vld [vmem:[#allocation2 + $0x1c8] sm:$0xff]  }
  0x22   :  { %1071 = vmatpush3.bf16.msra.mxu1 %v1185_v19  ;;  %1050 = vmatprep.subr.bf16.mxu0 %v1186_v20  ;;  %v1223_v9 = vld [vmem:[#allocation2 + $0x198] sm:$0xff]   ;;  %v1226_v12 = vld [vmem:[#allocation2 + $0x110] sm:$0xff]   ;;  %v1230_v16 = vld [vmem:[#allocation2 + $0x108] sm:$0xff]  }
  0x23   :  { %1072 = vmatprep.subr.bf16.mxu1 %v1187_v21  ;;  %691 = vmatprep.mubr.bf16.mxu0 %v133_v54  ;;  %v1227_v13 = vld [vmem:[#allocation2 + $0x190] sm:$0xff]   ;;  %v1231_v17 = vld [vmem:[#allocation2 + $0x188] sm:$0xff]   ;;  %v1232_v18 = vld [vmem:[#allocation2 + $0x140] sm:$0xff]  }
  0x24   :  { %731 = vmatprep.mubr.bf16.mxu1 %v135_v57  ;;  %v1233_v19 = vld [vmem:[#allocation2 + $0x1c0] sm:$0xff]   ;;  %v1240_v24 = vld [vmem:[%s1412_s0 + $0xc] ss:$16 sps:$4 sm:$0xff]  }
  0x25   :  { %1051 = vmatpush3.bf16.msra.mxu0 %v1188_v22  ;;  %v1234_v20 = vld [vmem:[#allocation2 + $0x100] sm:$0xff]   ;;  %v1236_v22 = vld [vmem:[%s1412_s0 + $0x8] ss:$16 sps:$4 sm:$0xff]   ;;  %v1241_v25 = vld [vmem:[%s1412_s0 + $0x2c] ss:$16 sps:$4 sm:$0xff]  }
  0x26   :  { %1073 = vmatpush3.bf16.msra.mxu1 %v1189_v23  ;;  %1052 = vmatprep.subr.bf16.mxu0 %v1190_v27  ;;  %v1235_v21 = vld [vmem:[#allocation2 + $0x180] sm:$0xff]   ;;  %v1238_v23 = vld [vmem:[%s1412_s0 + $0x28] ss:$16 sps:$4 sm:$0xff]   ;;  %v98_v26 = vrot.slane %v1236_v22, %v1342_v37 }
  0x27   :  { %1074 = vmatprep.subr.bf16.mxu1 %v1191_v28  ;;  %v112_v27 = vrot.slane %v1238_v23, %v1342_v37  ;;  %v105_v28 = vrot.slane %v1240_v24, %v1342_v37  ;;  %v1242_v40 = vld [vmem:[%s1415_s3 + $0x38] sm:$0xff]   ;;  %v1244_v41 = vld [vmem:[%s1415_s3 + $0x28] sm:$0xff]   ;;  %v1245_v42 = vld [vmem:[%s1415_s3 + $0x20] sm:$0xff]  }
  0x28   :  { %v1246_v43 = vld [vmem:[%s1415_s3 + $0x18] sm:$0xff]   ;;  %v1248_v45 = vld [vmem:[%s1415_s3 + $0x8] sm:$0xff]   ;;  %v1249_v46 = vld [vmem:[%s1415_s3] sm:$0xff]  }
  0x29   :  { %1053 = vmatpush3.bf16.msra.mxu0 %v1192_v29  ;;  %v119_v29 = vrot.slane %v1241_v25, %v1342_v37  ;;  %v120_v31 = vcombine.low %v98_v26, %v112_v27  ;;  %v1243_v37 = vld [vmem:[%s1415_s3 + $0x30] sm:$0xff]  }
  0x2a   :  { %1075 = vmatpush3.bf16.msra.mxu1 %v1193_v30  ;;  %1054 = vmatprep.subr.bf16.mxu0 %v1194_v33  ;;  %v121_v30 = vcombine.high %v98_v26, %v112_v27 }
  0x2b   :  { %1076 = vmatprep.subr.bf16.mxu1 %v1195_v34  ;;  %v123_v32 = vcombine.high %v105_v28, %v119_v29  ;;  %v122_v33 = vcombine.low %v105_v28, %v119_v29 }
  0x2c   :  { %v137_v34 = vpack.c.bf16 %v121_v30, %v121_v30 }
  0x2d   :  { %1055 = vmatpush3.bf16.msra.mxu0 %v1196_v35  ;;  %v136_v35 = vpack.c.bf16 %v120_v31, %v120_v31  ;;  %v138_v38 = vpack.c.bf16 %v122_v33, %v122_v33 }
  0x2e   :  { %1077 = vmatpush3.bf16.msra.mxu1 %v1197_v36  ;;  %1084 = vmatprep.subr.bf16.mxu0 %v1204_v44  ;;  %v139_v36 = vpack.c.bf16 %v123_v32, %v123_v32  ;;  %v1247_v44 = vld [vmem:[%s1415_s3 + $0x10] sm:$0xff]  }
  0x2f   :  { %1106 = vmatprep.subr.bf16.mxu1 %v1205_v47 }
  0x30   :  { %692 = vmatmul.mubr.bf16.vlgmr.msra.gmra.mxu0 %v132_v55 }
  0x31   :  { %732 = vmatmul.mubr.bf16.vlgmr.msra.gmra.mxu1 %v134_v58  ;;  %1085 = vmatpush3.bf16.msra.mxu0 %v1206_v50 }
  0x32   :  { %1107 = vmatpush3.bf16.msra.mxu1 %v1207_v53  ;;  %1086 = vmatprep.subr.bf16.mxu0 %v1208_v56  ;;  %v966_v56 = vld [vmem:[%s1414_s2] ss:$0 sm:$0xff] }
  0x33   :  { %1108 = vmatprep.subr.bf16.mxu1 %v1209_v59  ;;  %771 = vmatprep.mubr.bf16.mxu0 %v137_v34 }
  0x34   :  { %811 = vmatprep.mubr.bf16.mxu1 %v139_v36 }
  0x35   :  { %1087 = vmatpush3.bf16.msra.mxu0 %v1210_v60 }
  0x36   :  { %1109 = vmatpush3.bf16.msra.mxu1 %v1211_v61  ;;  %1088 = vmatprep.subr.bf16.mxu0 %v1212_v62 }
  0x37   :  { %1110 = vmatprep.subr.bf16.mxu1 %v1213_v63 }
  0x39   :  { %1089 = vmatpush3.bf16.msra.mxu0 %v1214_v0 }
  0x3a   :  { %1111 = vmatpush3.bf16.msra.mxu1 %v1215_v1  ;;  %1090 = vmatprep.subr.bf16.mxu0 %v1216_v2 }
  0x3b   :  { %1112 = vmatprep.subr.bf16.mxu1 %v1217_v3 }
  0x3d   :  { %1091 = vmatpush3.bf16.msra.mxu0 %v1218_v4 }
  0x3e   :  { %1113 = vmatpush3.bf16.msra.mxu1 %v1219_v5  ;;  %1092 = vmatprep.subr.bf16.mxu0 %v1220_v6 }
  0x3f   :  { %1114 = vmatprep.subr.bf16.mxu1 %v1221_v7 }
  0x41   :  { %1093 = vmatpush3.bf16.msra.mxu0 %v1222_v8 }
  0x42   :  { %1115 = vmatpush3.bf16.msra.mxu1 %v1223_v9  ;;  %1094 = vmatprep.subr.bf16.mxu0 %v1224_v10 }
  0x43   :  { %1116 = vmatprep.subr.bf16.mxu1 %v1225_v11 }
  0x45   :  { %1095 = vmatpush3.bf16.msra.mxu0 %v1226_v12 }
  0x46   :  { %1117 = vmatpush3.bf16.msra.mxu1 %v1227_v13  ;;  %1096 = vmatprep.subr.bf16.mxu0 %v1228_v14  ;;  %v1031_v14 = vld [vmem:[%s1416_s4] ss:$0 sm:$0xff] }
  0x47   :  { %1118 = vmatprep.subr.bf16.mxu1 %v1229_v15 }
  0x49   :  { %1097 = vmatpush3.bf16.msra.mxu0 %v1230_v16 }
  0x4a   :  { %1119 = vmatpush3.bf16.msra.mxu1 %v1231_v17  ;;  %1098 = vmatprep.subr.bf16.mxu0 %v1232_v18 }
  0x4b   :  { %1120 = vmatprep.subr.bf16.mxu1 %v1233_v19 }
  0x4d   :  { %1099 = vmatpush3.bf16.msra.mxu0 %v1234_v20 }
  0x4e   :  { %1121 = vmatpush3.bf16.msra.mxu1 %v1235_v21  ;;  %1137 = vmatprep.subr.bf16.mxu0 %v1304_v39 }
  0x50   :  { %772 = vmatmul.mubr.bf16.vlgmr.msra.gmra.mxu0 %v136_v35 }
  0x51   :  { %812 = vmatmul.mubr.bf16.vlgmr.msra.gmra.mxu1 %v138_v38  ;;  %1138 = vmatpush3.bf16.msra.mxu0 %v1242_v40 }
  0x52   :  { %1139 = vmatprep.subr.bf16.mxu0 %v1304_v39  ;;  %1153 = vmatprep.mubr.msk.bf16.mxu0 %vm1305_vm0, %v1304_v39 }
  0x55   :  { %1140 = vmatpush3.bf16.msra.mxu0 %v1243_v37 }
  0x56   :  { %1141 = vmatprep.subr.bf16.mxu0 %v1304_v39 }
  0x59   :  { %1142 = vmatpush3.bf16.msra.mxu0 %v1244_v41 }
  0x5a   :  { %1143 = vmatprep.subr.bf16.mxu0 %v1304_v39 }
  0x5d   :  { %1144 = vmatpush3.bf16.msra.mxu0 %v1245_v42 }
  0x5e   :  { %1145 = vmatprep.subr.bf16.mxu0 %v1304_v39 }
  0x61   :  { %1146 = vmatpush3.bf16.msra.mxu0 %v1246_v43 }
  0x62   :  { %1147 = vmatprep.subr.bf16.mxu0 %v1304_v39 }
  0x65   :  { %1148 = vmatpush3.bf16.msra.mxu0 %v1247_v44 }
  0x66   :  { %1149 = vmatprep.subr.bf16.mxu0 %v1304_v39 }
  0x69   :  { %1150 = vmatpush3.bf16.msra.mxu0 %v1248_v45 }
  0x6a   :  { %1151 = vmatprep.subr.bf16.mxu0 %v1304_v39 }
  0x6d   :  { %1152 = vmatpush3.bf16.msra.mxu0 %v1249_v46 }
  0xf0   :  { %v1056_v47 = vpop.f32.mrf.mxu0 }
  0xf1   :  { %v1078_v48 = vpop.f32.mrf.mxu1 }
  0xf2   :  { %v1057_v49 = vpop.f32.mrf.mxu0 }
  0xf3   :  { %v1079_v50 = vpop.f32.mrf.mxu1  ;;  %v1058_v55 = vadd.f32 %v1057_v49, %v1056_v47 }
  0xf4   :  { %v1059_v51 = vpop.f32.mrf.mxu0  ;;  %v1080_v58 = vadd.f32 %v1079_v50, %v1078_v48 }
  0xf5   :  { %v1081_v52 = vpop.f32.mrf.mxu1  ;;  %v694_v57 = vadd.f32 %v1058_v55, %v966_v56 }
  0xf6   :  { %v1060_v53 = vpop.f32.mrf.mxu0 }
  0xf7   :  { %v1082_v54 = vpop.f32.mrf.mxu1  ;;  %v734_v62 = vadd.f32 %v1080_v58, %v694_v57 }
 0x110   :  { %v1100_v59 = vpop.f32.mrf.mxu0 }
 0x111   :  { %v1122_v60 = vpop.f32.mrf.mxu1 }
 0x112   :  { %v1101_v61 = vpop.f32.mrf.mxu0 }
 0x113   :  { %v1102_v63 = vadd.f32 %v1101_v61, %v1100_v59  ;;  %v1123_v0 = vpop.f32.mrf.mxu1 }
 0x114   :  { %v1103_v1 = vpop.f32.mrf.mxu0  ;;  %v1124_v3 = vadd.f32 %v1123_v0, %v1122_v60 }
 0x115   :  { %v774_v2 = vadd.f32 %v1102_v63, %v734_v62  ;;  %v1125_v4 = vpop.f32.mrf.mxu1 }
 0x116   :  { %v1104_v5 = vpop.f32.mrf.mxu0 }
 0x117   :  { %v814_v6 = vadd.f32 %v1124_v3, %v774_v2  ;;  %v1126_v7 = vpop.f32.mrf.mxu1 }
 0x119   :  { %v820_v8 = vmul.f32 0.70710677, %v814_v6  ;;  %v819_v10 = vmul.f32 0.5, %v814_v6 }
 0x11b   :  { %1250 = verf.f32 %v820_v8 }
 0x128   :  { %v1251_v9 = vpop.eup %1250 }
 0x129   :  { %v822_v11 = vadd.f32 1.0, %v1251_v9 }
 0x12b   :  { %v823_v12 = vmul.f32 %v822_v11, %v819_v10 }
 0x12d   :  { %v824_v13 = vpack.c.bf16 %v823_v12, %v823_v12 }
 0x12f   :  { %1154 = vmatmul.mubr.bf16.vlgmr.msra.gmra.mxu0 %v824_v13 }
 0x1ef   :  { %v930_v15 = vpop.f32.mrf.mxu0 }
 0x1f0   :  { %v931_v16 = vadd.f32 %v1031_v14, %v930_v15 }
 0x1f1   :  { %v1155_v17 = vpop.f32.mrf.mxu0 }
 0x1f2   :  { %v937_v18 = vsel %vm936_vm1, %v931_v16, -inf }
 0x1f3   :  { %938 = vmax.xlane.f32.xlu0 %v937_v18  ;;  %v933_v19 = vpop.f32.mrf.mxu0 }
 0x1f5   :  { %v1156_v20 = vpop.f32.mrf.mxu0 }
 0x27c   :  { %v939_v21 = vpop.xlane.xlu0 %938 }
 0x27d   :  { %v940_v22 = vsub.f32 %v931_v16, %v939_v21 }
 0x27f   :  { %v941_v23 = vmul.f32 1.442695, %v940_v22 }
 0x281   :  { %1252 = vpow2.f32 %v941_v23 }
 0x28e   :  { %v1253_v24 = vpop.eup %1252 }
 0x28f   :  { %v943_v25 = vsel %vm936_vm1, %v1253_v24, 0.0 }
 0x290   :  { %944 = vadd.xlane.f32.xlu0 %v943_v25 }
 0x319   :  { %v945_v26 = vpop.xlane.xlu0 %944 }
 0x31a   :  { %1254 = vrcp.f32 %v945_v26 }
 0x327   :  { %v1255_v27 = vpop.eup %1254 }
 0x328   :  { %v947_v28 = vmul.f32 %v1255_v27, %v1253_v24 }
 0x32a   :  { %948 = vst.msk [vmem:[#allocation5] sm:$0xff] %vm936_vm1, %v947_v28 }
 0x32b   :  { %953 = vsyncadd [#allocation4], 96  ;;  %s1306_s4 = smov [#allocation5]  }
 0x32c   :  { %s954_s6 = sshll.u32 %s1306_s4, 4  ;;  %s955_s6 = int_to_ptr.vmem [resolvable:$true] %s954_s6 }
 0x32d   :  { %s1276_s7 = scalar_lea.vmem %s955_s6, 32  ;;  %s1280_s8 = scalar_lea.vmem %s955_s6, 128 }
 0x32e   :  { %p1277_p5 = scmp.ne.s32.totalorder %s955_s6, %s1276_s7  ;;  %p1281_p6 = scmp.lt.s32.totalorder %s955_s6, %s955_s6 }
 0x32f   :  { %p1282_p7 = scmp.lt.s32.totalorder %s1280_s8, %s1276_s7 }
 0x331   :  { %p1283_p8 = por %p1282_p7, %p1281_p6 }
 0x333   :  { %p1284_p9 = pnand %p1283_p8, %p1277_p5 }
 0x335   :  { %1287 = shalt.err (!%p1284_p9)
}
 0x336   :  { %s1307_s9 = smov 32   ;;  %s1308_s10 = smov 2  }
 0x337   :  { %960 = dma.vmem_to_hbm [thread:$0]  %s955_s6, 32, %s1417_s5, [#allocation4], %s1307_s9, %s1307_s9, %s1308_s10  }
 0x338   :  { %1298 = dma.done.wait [#allocation4], 128  }
 0x339   :  { %1299 = vsyncadd [#allocation4], 4294967168 }
 0x33a   :  { %964 = vsyncpa [#allocation3], 1 }
 0x33b   :  { %965 = vsyncpa [#allocation4], 1 }

</bundles_post_ra>
